<compile_context>
chip_gen: v5e
topology: v5e:2x2
jax: 0.10.0
libtpu: 0.0.40
codegen_flags: <defaults>
</compile_context>

<pallas_src>
import math

import jax
import jax.numpy as jnp
from jax.experimental import pallas as pl
from jax.experimental.pallas import tpu as pltpu


def _round_up(a, b):
    return (a + b - 1) // b * b


def _patch_embed_kernel(x_ref, w_ref, b_ref, o_ref):
    # x_ref: (tm, K)  w_ref: (K, E_pad)  b_ref: (1, E_pad)  o_ref: (tm, E_pad)
    y = jnp.dot(x_ref[...], w_ref[...], preferred_element_type=jnp.float32)
    y = y + b_ref[...].astype(jnp.float32)   # (1, E_pad) -> (tm, E_pad) broadcast
    o_ref[...] = y.astype(o_ref.dtype)


def _pick_tm(M, K, E_pad, x_bytes, w_bytes, out_bytes, vmem_budget):
    """Row-tile choice: MXU-friendly 256-multiples, >=2 grid steps, VMEM-capped."""
    if M <= 256:
        return max(8, _round_up(M, 8))          # one small sublane-aligned tile
    tm = min(1024, _round_up(M, 256))
    # Keep >= 2 grid steps so "parallel" can shard rows across v7x's 2 TCs.
    tm = min(tm, _round_up(pl.cdiv(M, 2), 256))
    # Cap so double-buffered x/out tiles + (double-buffered) W/bias fit VMEM.
    fixed = 2 * (K * E_pad * w_bytes + E_pad * out_bytes)
    per_row = 2 * (K * x_bytes + E_pad * out_bytes)
    while tm > 256 and fixed + tm * per_row > vmem_budget:
        tm -= 256
    return tm


def patchify_embed_forward(x, w_conv, bias, patch_size, *, tm=None):
    """x: (B, C, H, W). w_conv: (E, C, p, p) (nn.Conv2d layout). bias: (E,).

    Returns (B, n_patches, E), matching Conv2d -> flatten(-2,-1) -> transpose(1,2).
    """
    B, C, H, W = x.shape
    E = w_conv.shape[0]
    p = patch_size
    Hp, Wp = H // p, W // p
    n_patches = Hp * Wp
    M = B * n_patches
    K = C * p * p

    # --- patch extraction: layout plumbing only (eligible for input fusion) ---
    # Patch row order = (b, hp, wp); per-patch feature order = (c, i, j),
    # matching the Conv2d weight flatten order.
    patches = x.reshape(B, C, Hp, p, Wp, p).transpose(0, 2, 4, 1, 3, 5).reshape(M, K)

    w_mat = jnp.reshape(w_conv, (E, K)).T     # (K, E): kernel computes patches @ W
    b_row = bias.reshape(1, E)

    # Lane-dense output: pad only the tiny weight/bias along E (no-op for
    # standard ViT embed dims, which are already multiples of 128).
    E_pad = _round_up(E, 128)
    if E_pad > E:
        w_mat = jnp.pad(w_mat, ((0, 0), (0, E_pad - E)))
        b_row = jnp.pad(b_row, ((0, 0), (0, E_pad - E)))

    x_bytes = jnp.dtype(x.dtype).itemsize
    w_bytes = jnp.dtype(w_mat.dtype).itemsize
    b_bytes = jnp.dtype(b_row.dtype).itemsize
    out_dtype = x.dtype
    out_bytes = jnp.dtype(out_dtype).itemsize

    if tm is None:
        tm = _pick_tm(M, K, E_pad, x_bytes, w_bytes, out_bytes,
                      vmem_budget=40 * 1024 * 1024)
    grid = pl.cdiv(M, tm)                     # partial last block is masked

    # Bytes the kernel actually streams: tiled patches + output once, W/bias once.
    cost = pl.CostEstimate(
        flops=2 * M * K * E_pad,
        transcendentals=0,
        bytes_accessed=(M * K * x_bytes + K * E_pad * w_bytes
                        + E_pad * b_bytes + M * E_pad * out_bytes),
    )

    out = pl.pallas_call(
        _patch_embed_kernel,
        out_shape=jax.ShapeDtypeStruct((M, E_pad), out_dtype),
        grid_spec=pltpu.PrefetchScalarGridSpec(
            num_scalar_prefetch=0,
            grid=(grid,),
            in_specs=[
                # Row tile of patches; full (un-padded) K as the lane dim.
                pl.BlockSpec((tm, K), lambda i: (i, 0)),
                # Weight / bias: constant index_map -> DMA'd once, stay resident.
                pl.BlockSpec((K, E_pad), lambda i: (0, 0)),
                pl.BlockSpec((1, E_pad), lambda i: (0, 0)),
            ],
            out_specs=pl.BlockSpec((tm, E_pad), lambda i: (i, 0)),
        ),
        compiler_params=pltpu.CompilerParams(
            dimension_semantics=("parallel",),
            # Let XLA fuse the reshape/transpose patch extraction into the
            # kernel's input DMA (avoids materializing `patches` in HBM).
            allow_input_fusion=[True, False, False],
            # Above v5e/v6e/v7x scoped defaults, below every chip's physical VMEM.
            vmem_limit_bytes=48 * 1024 * 1024,
        ),
        cost_estimate=cost,
    )(patches, w_mat, b_row)

    if E_pad > E:
        out = out[:, :E]                      # no-op for 128-multiple embed dims
    return out.reshape(B, n_patches, E)


def _init_conv(key, in_channels, embed_dim, patch_size, dtype=jnp.float32):
    """Deterministic Conv2d-style init: U(-1/sqrt(fan_in), 1/sqrt(fan_in))."""
    kw, kb = jax.random.split(key)
    fan_in = in_channels * patch_size * patch_size
    bound = 1.0 / math.sqrt(fan_in)
    w = jax.random.uniform(
        kw, (embed_dim, in_channels, patch_size, patch_size), dtype, -bound, bound)
    b = jax.random.uniform(kb, (embed_dim,), dtype, -bound, bound)
    return w, b


if __name__ == "__main__":
    # Small shapes: batch=2, channels=4, image 16x16, patch 4 -> 16 patches, E=96.
    B, C, img_size, patch_size, embed_dim = 2, 4, 16, 4, 96
    n_patches = (img_size // patch_size) ** 2

    key = jax.random.PRNGKey(0)
    kx, kw = jax.random.split(key)
    x = jax.random.normal(kx, (B, C, img_size, img_size), jnp.float32)
    w_conv, bias = _init_conv(kw, C, embed_dim, patch_size)

    fwd = jax.jit(patchify_embed_forward, static_argnums=(3,), static_argnames=("tm",))

    # Default tile (single tile at these tiny shapes) ...
    y = jax.block_until_ready(fwd(x, w_conv, bias, patch_size))
    # ... a small explicit tile to exercise the multi-step pipelined grid ...
    y_tiled = jax.block_until_ready(fwd(x, w_conv, bias, patch_size, tm=8))
    # ... and a tile that does NOT divide M to exercise the masked partial block.
    y_part = jax.block_until_ready(fwd(x, w_conv, bias, patch_size, tm=24))

    # Reference: real strided convolution + flatten + transpose (PyTorch semantics).
    y_ref = jax.lax.conv_general_dilated(
        x, w_conv, window_strides=(patch_size, patch_size), padding="VALID",
        dimension_numbers=("NCHW", "OIHW", "NCHW"))
    y_ref = y_ref + bias.reshape(1, embed_dim, 1, 1)
    y_ref = y_ref.reshape(B, embed_dim, n_patches).transpose(0, 2, 1)

    assert y.shape == (B, n_patches, embed_dim)
    assert jnp.allclose(y, y_ref, atol=1e-4, rtol=1e-4)
    assert jnp.allclose(y_tiled, y_ref, atol=1e-4, rtol=1e-4)
    assert jnp.allclose(y_part, y_ref, atol=1e-4, rtol=1e-4)

    print("KERNEL_OK")
</pallas_src>

<mosaic_0001>
module attributes {stable_mosaic.version = 11 : i64} {
  func.func @_patch_embed_kernel(%arg0: i32, %arg1: memref<32x64xf32, #tpu.memory_space<vmem>>, %arg2: memref<64x128xf32, #tpu.memory_space<vmem>>, %arg3: memref<1x128xf32, #tpu.memory_space<vmem>>, %arg4: memref<32x128xf32, #tpu.memory_space<vmem>>) attributes {dimension_semantics = [#tpu.dimension_semantics<parallel>], iteration_bounds = array<i64: 1>, scalar_prefetch = 0 : i64, scratch_operands = 0 : i64, tpu.core_type = #tpu.core_type<tc>, window_params = [{transform_indices = @transform_0, window_bounds = array<i64: 32, 64>}, {pipeline_mode = #tpu.pipeline_mode<synchronous>, transform_indices = @transform_1, window_bounds = array<i64: 64, 128>}, {pipeline_mode = #tpu.pipeline_mode<synchronous>, transform_indices = @transform_2, window_bounds = array<i64: 1, 128>}, {transform_indices = @transform_3, window_bounds = array<i64: 32, 128>}]} {
    %c0 = arith.constant 0 : index
    %c0_0 = arith.constant 0 : index
    %0 = vector.load %arg1[%c0, %c0_0] : memref<32x64xf32, #tpu.memory_space<vmem>>, vector<32x64xf32>
    %c0_1 = arith.constant 0 : index
    %c0_2 = arith.constant 0 : index
    %1 = vector.load %arg2[%c0_1, %c0_2] : memref<64x128xf32, #tpu.memory_space<vmem>>, vector<64x128xf32>
    %cst = arith.constant dense<0.000000e+00> : vector<32x128xf32>
    %2 = tpu.matmul %0, %1, %cst {dimension_numbers = #tpu.dot_dimension_numbers<[1], [0], [0], [1], [0, 0, 1, 1], [], []>} : vector<32x64xf32>, vector<64x128xf32>, vector<32x128xf32> -> vector<32x128xf32>
    %c0_3 = arith.constant 0 : index
    %c0_4 = arith.constant 0 : index
    %3 = vector.load %arg3[%c0_3, %c0_4] : memref<1x128xf32, #tpu.memory_space<vmem>>, vector<1x128xf32>
    %4 = vector.broadcast %3 : vector<1x128xf32> to vector<32x128xf32>
    %5 = arith.addf %2, %4 : vector<32x128xf32>
    %c0_5 = arith.constant 0 : index
    %c0_6 = arith.constant 0 : index
    %6 = vector.load %arg4[%c0_5, %c0_6] : memref<32x128xf32, #tpu.memory_space<vmem>>, vector<32x128xf32>
    tpu.vector_store %arg4[%c0_5, %c0_6], %5 {strides = array<i32>} : memref<32x128xf32, #tpu.memory_space<vmem>>, vector<32x128xf32>,
    return
  }
  func.func @transform_0(%arg0: i32) -> (i32, i32) {
    %c0_i32 = arith.constant 0 : i32
    %c0_i32_0 = arith.constant 0 : i32
    return %arg0, %c0_i32 : i32, i32
  }
  func.func @transform_1(%arg0: i32) -> (i32, i32) {
    %c0_i32 = arith.constant 0 : i32
    %c0_i32_0 = arith.constant 0 : i32
    %c0_i32_1 = arith.constant 0 : i32
    return %c0_i32, %c0_i32_0 : i32, i32
  }
  func.func @transform_2(%arg0: i32) -> (i32, i32) {
    %c0_i32 = arith.constant 0 : i32
    %c0_i32_0 = arith.constant 0 : i32
    %c0_i32_1 = arith.constant 0 : i32
    return %c0_i32, %c0_i32_0 : i32, i32
  }
  func.func @transform_3(%arg0: i32) -> (i32, i32) {
    %c0_i32 = arith.constant 0 : i32
    %c0_i32_0 = arith.constant 0 : i32
    return %arg0, %c0_i32 : i32, i32
  }
}

</mosaic_0001>

<bundles_post_ra>
// kernel: patchify_embed_forward.1
= control target key start
LH: loop header
LB: loop body
LE: loop exit
PB: predicated region body
PF: predicated region fallthrough
CT: control target
= control target key end

     0   :  { %s218_s0 = inlined_call_operand.vmem [shape: f32[32,64], index: 0, kind: input, shape index: {}]   ;;  %s219_s1 = inlined_call_operand.vmem [shape: f32[64,128], index: 1, kind: input, shape index: {}]   ;;  %s220_s2 = inlined_call_operand.vmem [shape: f32[1,128], index: 2, kind: input, shape index: {}]   ;;  %s221_s3 = inlined_call_operand.hbm [shape: f32[32,128], index: 3, kind: output, shape index: {}]  }
   0x1   :  { %v26_v0 = vld [vmem:[%s219_s1 + $0x38] sm:$0xff]  ;;  %v25_v1 = vld [vmem:[%s219_s1 + $0x30] sm:$0xff]  ;;  %v24_v2 = vld [vmem:[%s219_s1 + $0x28] sm:$0xff] }
   0x2   :  { %100 = vmatpush.msra.mxu2 %v26_v0  ;;  %101 = vmatpush.msra.mxu3 %v26_v0  ;;  %v23_v3 = vld [vmem:[%s219_s1 + $0x20] sm:$0xff] }
   0x3   :  { %52 = vmatpush.msra.mxu0 %v26_v0  ;;  %99 = vmatpush.msra.mxu1 %v26_v0 }
   0x4   :  { %103 = vmatpush.msra.mxu2 %v25_v1  ;;  %104 = vmatpush.msra.mxu3 %v25_v1 }
   0x5   :  { %53 = vmatpush.msra.mxu0 %v25_v1  ;;  %102 = vmatpush.msra.mxu1 %v25_v1 }
   0x6   :  { %8 = vsyncpa [#allocation3], 0  ;;  %106 = vmatpush.msra.mxu2 %v24_v2  ;;  %107 = vmatpush.msra.mxu3 %v24_v2  ;;  %v22_v4 = vld [vmem:[%s219_s1 + $0x18] sm:$0xff]  ;;  %v21_v5 = vld [vmem:[%s219_s1 + $0x10] sm:$0xff]  ;;  %vm31_vm0 = vcmask 523264   ;;  %s153_s10 = smov [#allocation2]  }
   0x7   :  { %54 = vmatpush.msra.mxu0 %v24_v2  ;;  %105 = vmatpush.msra.mxu1 %v24_v2  ;;  %v20_v6 = vld [vmem:[%s219_s1 + $0x8] sm:$0xff]  ;;  %v19_v7 = vld [vmem:[%s219_s1] sm:$0xff]  ;;  %v17_v8 = vld [vmem:[%s218_s0 + $0x10] sm:$0xff]  ;;  %s81_s11 = sshll.u32 %s153_s10, 4  ;;  %s155_s14 = smov 8   ;;  %s82_s11 = int_to_ptr.vmem [resolvable:$true] %s81_s11 }
   0x8   :  { %109 = vmatpush.msra.mxu2 %v23_v3  ;;  %110 = vmatpush.msra.mxu3 %v23_v3  ;;  %v18_v9 = vld [vmem:[%s218_s0 + $0x18] sm:$0xff]  ;;  %v15_v10 = vld [vmem:[%s218_s0] sm:$0xff]  ;;  %v16_v11 = vld [vmem:[%s218_s0 + $0x8] sm:$0xff]  ;;  %s83_s0 = sshll.u32 %s221_s3, 4  ;;  %s84_s0 = int_to_ptr.hbm [resolvable:$true] %s83_s0 }
   0x9   :  { %55 = vmatpush.msra.mxu0 %v23_v3  ;;  %108 = vmatpush.msra.mxu1 %v23_v3  ;;  %v126_v12 = vld [vmem:[%s220_s2] ss:$0 sm:$0xff]  ;;  %s154_s2 = smov 128  }
   0xa   :  { %112 = vmatpush.msra.mxu2 %v22_v4  ;;  %113 = vmatpush.msra.mxu3 %v22_v4 }
   0xb   :  { %56 = vmatpush.msra.mxu0 %v22_v4  ;;  %111 = vmatpush.msra.mxu1 %v22_v4 }
   0xc   :  { %115 = vmatpush.msra.mxu2 %v21_v5  ;;  %116 = vmatpush.msra.mxu3 %v21_v5 }
   0xd   :  { %57 = vmatpush.msra.mxu0 %v21_v5  ;;  %114 = vmatpush.msra.mxu1 %v21_v5 }
   0xe   :  { %118 = vmatpush.msra.mxu2 %v20_v6  ;;  %119 = vmatpush.msra.mxu3 %v20_v6 }
   0xf   :  { %58 = vmatpush.msra.mxu0 %v20_v6  ;;  %117 = vmatpush.msra.mxu1 %v20_v6 }
  0x10   :  { %121 = vmatpush.msra.mxu2 %v19_v7  ;;  %122 = vmatpush.msra.mxu3 %v19_v7 }
  0x11   :  { %97 = vmatmul.msk.f32.vlgmr.msra.gmra.mxu2 %vm31_vm0, %v17_v8  ;;  %98 = vmatmul.msk.f32.vlgmr.msra.gmra.mxu3 %vm31_vm0, %v18_v9 }
  0x12   :  { %59 = vmatpush.msra.mxu0 %v19_v7  ;;  %120 = vmatpush.msra.mxu1 %v19_v7 }
  0x13   :  { %95 = vmatmul.msk.f32.vlgmr.msra.gmra.mxu0 %vm31_vm0, %v15_v10  ;;  %96 = vmatmul.msk.f32.vlgmr.msra.gmra.mxu1 %vm31_vm0, %v16_v11 }
  0x90   :  { %v61_v13 = vpop.f32.mrf.mxu0  ;;  %v64_v14 = vpop.f32.mrf.mxu1 }
  0x91   :  { %v62_v15 = vadd.f32 %v126_v12, %v61_v13  ;;  %v65_v16 = vadd.f32 %v126_v12, %v64_v14 }
  0x93   :  { %73 = vst [vmem:[#allocation2] sm:$0xff] %v62_v15 }
  0x94   :  { %74 = vst [vmem:[#allocation2 + $0x8] sm:$0xff] %v65_v16  ;;  %v67_v17 = vpop.f32.mrf.mxu2  ;;  %v70_v18 = vpop.f32.mrf.mxu3 }
  0x95   :  { %v68_v19 = vadd.f32 %v126_v12, %v67_v17  ;;  %v71_v20 = vadd.f32 %v126_v12, %v70_v18 }
  0x97   :  { %75 = vst [vmem:[#allocation2 + $0x10] sm:$0xff] %v68_v19 }
  0x98   :  { %76 = vst [vmem:[#allocation2 + $0x18] sm:$0xff] %v71_v20 }
  0x99   :  { %89 = dma.vmem_to_hbm [thread:$0]  %s82_s11, 512, %s84_s0, [#allocation3], %s154_s2, %s154_s2, %s155_s14  }
  0x9a   :  { %151 = dma.done.wait [#allocation3], 512  }
  0x9b   :  { %152 = vsyncadd [#allocation3], 4294966784 }
  0x9c   :  { %94 = vsyncpa [#allocation3], 1 }

</bundles_post_ra>
